<compile_context>
chip_gen: v7x
topology: tpu7x:2x2x1
jax: 0.10.0
libtpu: 0.0.40
codegen_flags: <defaults>
</compile_context>

<pallas_src>
import jax
import jax.numpy as jnp
from jax import lax
from jax.experimental import pallas as pl
from jax.experimental.pallas import tpu as pltpu


def _seq_lstm_classify_kernel(
    embs_ref,      # (T*B, E) bf16 -- embeddings of ids[1:], time-major, flattened
    len_ref,       # (B, 1) i32    -- effective lengths (= original lengths - 1)
    lab_ref,       # (B, 1) i32    -- class labels
    wih_ref,       # (E, 4H) bf16  -- W_ih^T
    whh_ref,       # (H, 4H) bf16  -- W_hh^T
    b_ref,         # (1, 4H) f32   -- b_ih + b_hh
    wo_ref,        # (H, V) bf16   -- logits weight^T
    bo_ref,        # (1, V) f32    -- logits bias
    hN_ref,        # (B, H) f32 out: final hidden state (enc_state h_n, layer 0)
    cN_ref,        # (B, H) f32 out: final cell state   (enc_state c_n, layer 0)
    logits_ref,    # (B, V) f32 out
    loss_ref,      # (1, 1) f32 out (SMEM)
    ncorrect_ref,  # (1, 1) i32 out (SMEM)
):
    B = len_ref.shape[0]
    TB, _ = embs_ref.shape
    T = TB // B
    H = whh_ref.shape[0]
    V = wo_ref.shape[1]

    # ---- hoisted, loop-invariant work --------------------------------------
    whh = whh_ref[...]                         # keep W_hh resident for the loop
    lengths = len_ref[...]                     # (B, 1)

    # One batched input projection for all timesteps (single MXU pass) + bias.
    x_proj = (
        jnp.dot(embs_ref[...], wih_ref[...], preferred_element_type=jnp.float32)
        + b_ref[...]
    )                                          # (T*B, 4H) f32

    # Precomputed packed-sequence validity mask, indexed statically per step.
    mask = lax.broadcasted_iota(jnp.int32, (T, B, 1), 0) < lengths[None, :, :]

    h = jnp.zeros((B, H), jnp.float32)
    c = jnp.zeros((B, H), jnp.float32)

    # ---- statically unrolled recurrence (T is small and fixed) -------------
    for t in range(T):
        # static, sublane-aligned slice of the hoisted projection (rows t*B:(t+1)*B)
        gates = x_proj[t * B:(t + 1) * B, :] + jnp.dot(
            h.astype(whh.dtype), whh, preferred_element_type=jnp.float32
        )                                      # (B, 4H) f32

        # Two full-vreg EUP passes, then slice i/f/g/o out of the results.
        sig = jax.nn.sigmoid(gates)
        tnh = jnp.tanh(gates)
        i_g = sig[:, 0 * H:1 * H]
        f_g = sig[:, 1 * H:2 * H]
        o_g = sig[:, 3 * H:4 * H]
        g_g = tnh[:, 2 * H:3 * H]

        c_new = f_g * c + i_g * g_g
        h_new = o_g * jnp.tanh(c_new)

        # packed-sequence semantics: freeze state once t >= effective length
        valid = mask[t]                        # (B, 1) bool, broadcasts over H
        h = jnp.where(valid, h_new, h)
        c = jnp.where(valid, c_new, c)

    hN_ref[...] = h
    cN_ref[...] = c

    # ---- classifier head + loss / accuracy ----------------------------------
    # last_enc == h (hidden at last valid step of the top layer)
    logits = (
        jnp.dot(h.astype(wo_ref.dtype), wo_ref[...],
                preferred_element_type=jnp.float32)
        + bo_ref[...]
    )                                          # (B, V) f32
    logits_ref[...] = logits

    labels = lab_ref[...]                      # (B, 1) int32
    class_idx = lax.broadcasted_iota(jnp.int32, (B, V), 1)
    onehot = (class_idx == labels).astype(jnp.float32)

    # cross-entropy (mean reduction, matches nn.CrossEntropyLoss default)
    m = jnp.max(logits, axis=1, keepdims=True)
    lse = m + jnp.log(jnp.sum(jnp.exp(logits - m), axis=1, keepdims=True))
    correct_logit = jnp.sum(logits * onehot, axis=1, keepdims=True)
    loss_ref[0, 0] = jnp.sum(lse - correct_logit) * (1.0 / B)

    # argmax via iota trick: first index of the row max (float == against the
    # row's own max is exact/safe), matching torch.argmax tie-break.
    pred = jnp.min(jnp.where(logits == m, class_idx, V), axis=1, keepdims=True)
    ncorrect_ref[0, 0] = jnp.sum((pred == labels).astype(jnp.int32))


@jax.jit
def seq_lstm_classify_forward(embs, lengths_eff, labels, w_ih_t, w_hh_t, bias,
                              w_out_t, b_out):
    T, B, E = embs.shape
    H = w_hh_t.shape[0]
    V = w_out_t.shape[1]

    # bf16 MXU operands; accumulation stays f32 inside the kernel.
    mm_dtype = jnp.bfloat16
    embs2d = embs.astype(mm_dtype).reshape(T * B, E)   # time-major rows, block t = rows [t*B, (t+1)*B)

    zmap2 = lambda i: (0, 0)
    smem = pltpu.MemorySpace.SMEM

    out_shapes = (
        jax.ShapeDtypeStruct((B, H), jnp.float32),   # h_n
        jax.ShapeDtypeStruct((B, H), jnp.float32),   # c_n
        jax.ShapeDtypeStruct((B, V), jnp.float32),   # logits
        jax.ShapeDtypeStruct((1, 1), jnp.float32),   # loss (SMEM)
        jax.ShapeDtypeStruct((1, 1), jnp.int32),     # num_correct (SMEM)
    )

    # NOTE: at production sizes (large T / B), stream embeddings over a T grid
    # axis (v7x has only 64 MiB VMEM) and shard the batch across TensorCores
    # with a "parallel" leading grid axis; not worth it at these toy sizes.
    h_n, c_n, logits, loss, ncorrect = pl.pallas_call(
        _seq_lstm_classify_kernel,
        out_shape=out_shapes,
        grid=(1,),
        in_specs=[
            pl.BlockSpec((T * B, E), zmap2),
            pl.BlockSpec((B, 1), zmap2),
            pl.BlockSpec((B, 1), zmap2),
            pl.BlockSpec((E, 4 * H), zmap2),
            pl.BlockSpec((H, 4 * H), zmap2),
            pl.BlockSpec((1, 4 * H), zmap2),
            pl.BlockSpec((H, V), zmap2),
            pl.BlockSpec((1, V), zmap2),
        ],
        out_specs=[
            pl.BlockSpec((B, H), zmap2),
            pl.BlockSpec((B, H), zmap2),
            pl.BlockSpec((B, V), zmap2),
            pl.BlockSpec(memory_space=smem),
            pl.BlockSpec(memory_space=smem),
        ],
        compiler_params=pltpu.CompilerParams(
            dimension_semantics=("arbitrary",)
        ),
    )(
        embs2d,
        lengths_eff.reshape(B, 1).astype(jnp.int32),
        labels.reshape(B, 1).astype(jnp.int32),
        w_ih_t.astype(mm_dtype),
        w_hh_t.astype(mm_dtype),
        bias,
        w_out_t.astype(mm_dtype),
        b_out,
    )

    # enc_state as (h_n, c_n) each (num_layers=1, B, H), like PyTorch
    enc_state = (h_n[None, :, :], c_n[None, :, :])
    return enc_state, logits, loss[0, 0], ncorrect[0, 0]


if __name__ == "__main__":
    # Hyperparameters (stand-ins for `args` / vocab sizes)
    IN_VOCAB = 50
    OUT_VOCAB = 10
    EMB = 16      # args.emb_size
    HID = 32      # args.hidden_size
    NUM_LAYERS = 1
    B = 8         # batch
    T_TOTAL = 8   # full sequence length (ids includes the leading token)

    key = jax.random.PRNGKey(0)
    keys = jax.random.split(key, 10)

    # Deterministic parameter init (PyTorch-style uniform(-1/sqrt(H), 1/sqrt(H)))
    bound = 1.0 / jnp.sqrt(jnp.float32(HID))
    emb_table = jax.random.normal(keys[0], (IN_VOCAB, EMB), jnp.float32) * 0.1
    w_ih = jax.random.uniform(keys[1], (4 * HID, EMB), jnp.float32, -bound, bound)
    w_hh = jax.random.uniform(keys[2], (4 * HID, HID), jnp.float32, -bound, bound)
    b_ih = jax.random.uniform(keys[3], (4 * HID,), jnp.float32, -bound, bound)
    b_hh = jax.random.uniform(keys[4], (4 * HID,), jnp.float32, -bound, bound)
    w_out = jax.random.uniform(keys[5], (OUT_VOCAB, HID), jnp.float32, -bound, bound)
    b_out = jax.random.uniform(keys[6], (OUT_VOCAB,), jnp.float32, -bound, bound)

    # Inputs: (ids, lengths), labels
    ids = jax.random.randint(keys[7], (T_TOTAL, B), 0, IN_VOCAB, dtype=jnp.int32)
    # descending lengths (pack_padded_sequence default enforce_sorted=True)
    lengths = jnp.array([8, 8, 7, 7, 6, 6, 5, 5], dtype=jnp.int32)
    labels = jax.random.randint(keys[8], (B,), 0, OUT_VOCAB, dtype=jnp.int32)

    # Glue: embedding gather of ids[1:] -> (T, B, E)
    embs = emb_table[ids[1:]]
    lengths_eff = lengths - 1  # pack_padded_sequence(..., lengths - 1)

    enc_state, logits, loss, num_correct = seq_lstm_classify_forward(
        embs,
        lengths_eff,
        labels,
        jnp.transpose(w_ih),            # (E, 4H)
        jnp.transpose(w_hh),            # (H, 4H)
        (b_ih + b_hh).reshape(1, -1),   # (1, 4H)
        jnp.transpose(w_out),           # (H, V)
        b_out.reshape(1, -1),           # (1, V)
    )

    jax.block_until_ready((enc_state, logits, loss, num_correct))
    print("KERNEL_OK")
</pallas_src>

<mosaic_0001>
module attributes {stable_mosaic.version = 11 : i64} {
  func.func @_seq_lstm_classify_kernel(%arg0: i32, %arg1: memref<56x16xbf16, #tpu.memory_space<vmem>>, %arg2: memref<8x1xi32, #tpu.memory_space<vmem>>, %arg3: memref<8x1xi32, #tpu.memory_space<vmem>>, %arg4: memref<16x128xbf16, #tpu.memory_space<vmem>>, %arg5: memref<32x128xbf16, #tpu.memory_space<vmem>>, %arg6: memref<1x128xf32, #tpu.memory_space<vmem>>, %arg7: memref<32x10xbf16, #tpu.memory_space<vmem>>, %arg8: memref<1x10xf32, #tpu.memory_space<vmem>>, %arg9: memref<8x32xf32, #tpu.memory_space<vmem>>, %arg10: memref<8x32xf32, #tpu.memory_space<vmem>>, %arg11: memref<8x10xf32, #tpu.memory_space<vmem>>, %arg12: memref<1x1xf32, #tpu.memory_space<smem>>, %arg13: memref<1x1xi32, #tpu.memory_space<smem>>) attributes {dimension_semantics = [#tpu.dimension_semantics<arbitrary>], iteration_bounds = array<i64: 1>, scalar_prefetch = 0 : i64, scratch_operands = 0 : i64, tpu.core_type = #tpu.core_type<tc>, window_params = [{pipeline_mode = #tpu.pipeline_mode<synchronous>, transform_indices = @transform_0, window_bounds = array<i64: 56, 16>}, {pipeline_mode = #tpu.pipeline_mode<synchronous>, transform_indices = @transform_1, window_bounds = array<i64: 8, 1>}, {pipeline_mode = #tpu.pipeline_mode<synchronous>, transform_indices = @transform_2, window_bounds = array<i64: 8, 1>}, {pipeline_mode = #tpu.pipeline_mode<synchronous>, transform_indices = @transform_3, window_bounds = array<i64: 16, 128>}, {pipeline_mode = #tpu.pipeline_mode<synchronous>, transform_indices = @transform_4, window_bounds = array<i64: 32, 128>}, {pipeline_mode = #tpu.pipeline_mode<synchronous>, transform_indices = @transform_5, window_bounds = array<i64: 1, 128>}, {pipeline_mode = #tpu.pipeline_mode<synchronous>, transform_indices = @transform_6, window_bounds = array<i64: 32, 10>}, {pipeline_mode = #tpu.pipeline_mode<synchronous>, transform_indices = @transform_7, window_bounds = array<i64: 1, 10>}, {pipeline_mode = #tpu.pipeline_mode<synchronous>, transform_indices = @transform_8, window_bounds = array<i64: 8, 32>}, {pipeline_mode = #tpu.pipeline_mode<synchronous>, transform_indices = @transform_9, window_bounds = array<i64: 8, 32>}, {pipeline_mode = #tpu.pipeline_mode<synchronous>, transform_indices = @transform_10, window_bounds = array<i64: 8, 10>}, {transform_indices = @transform_11, window_bounds = array<i64: 1, 1>}, {transform_indices = @transform_12, window_bounds = array<i64: 1, 1>}]} {
    %c0 = arith.constant 0 : index
    %c0_0 = arith.constant 0 : index
    %0 = vector.load %arg5[%c0, %c0_0] : memref<32x128xbf16, #tpu.memory_space<vmem>>, vector<32x128xbf16>
    %c0_1 = arith.constant 0 : index
    %c0_2 = arith.constant 0 : index
    %1 = vector.load %arg2[%c0_1, %c0_2] : memref<8x1xi32, #tpu.memory_space<vmem>>, vector<8x1xi32>
    %c0_3 = arith.constant 0 : index
    %c0_4 = arith.constant 0 : index
    %2 = vector.load %arg1[%c0_3, %c0_4] : memref<56x16xbf16, #tpu.memory_space<vmem>>, vector<56x16xbf16>
    %c0_5 = arith.constant 0 : index
    %c0_6 = arith.constant 0 : index
    %3 = vector.load %arg4[%c0_5, %c0_6] : memref<16x128xbf16, #tpu.memory_space<vmem>>, vector<16x128xbf16>
    %cst = arith.constant dense<0.000000e+00> : vector<56x128xf32>
    %4 = tpu.matmul %2, %3, %cst {dimension_numbers = #tpu.dot_dimension_numbers<[1], [0], [0], [1], [0, 0, 1, 1], [], []>} : vector<56x16xbf16>, vector<16x128xbf16>, vector<56x128xf32> -> vector<56x128xf32>
    %c0_7 = arith.constant 0 : index
    %c0_8 = arith.constant 0 : index
    %5 = vector.load %arg6[%c0_7, %c0_8] : memref<1x128xf32, #tpu.memory_space<vmem>>, vector<1x128xf32>
    %6 = vector.broadcast %5 : vector<1x128xf32> to vector<56x128xf32>
    %7 = arith.addf %4, %6 : vector<56x128xf32>
    %8 = tpu.iota {dimensions = array<i32: 0>} : vector<7x8x1xi32>
    %9 = vector.shape_cast %1 : vector<8x1xi32> to vector<1x8x1xi32>
    %10 = vector.broadcast %9 : vector<1x8x1xi32> to vector<7x8x1xi32>
    %11 = arith.cmpi slt, %8, %10 : vector<7x8x1xi32>
    %cst_9 = arith.constant 0.000000e+00 : f32
    %12 = vector.broadcast %cst_9 : f32 to vector<8x32xf32>
    %cst_10 = arith.constant 0.000000e+00 : f32
    %13 = vector.broadcast %cst_10 : f32 to vector<8x32xf32>
    %14 = vector.extract_strided_slice %7 {offsets = [0, 0], sizes = [8, 128], strides = [1, 1]} : vector<56x128xf32> to vector<8x128xf32>
    %15 = arith.truncf %12 : vector<8x32xf32> to vector<8x32xbf16>
    %cst_11 = arith.constant dense<0.000000e+00> : vector<8x128xf32>
    %16 = tpu.matmul %15, %0, %cst_11 {dimension_numbers = #tpu.dot_dimension_numbers<[1], [0], [0], [1], [0, 0, 1, 1], [], []>} : vector<8x32xbf16>, vector<32x128xbf16>, vector<8x128xf32> -> vector<8x128xf32>
    %17 = arith.addf %14, %16 : vector<8x128xf32>
    %18 = arith.negf %17 : vector<8x128xf32>
    %19 = math.exp %18 : vector<8x128xf32>
    %cst_12 = arith.constant 1.000000e+00 : f32
    %20 = vector.broadcast %cst_12 : f32 to vector<8x128xf32>
    %21 = arith.addf %20, %19 : vector<8x128xf32>
    %22 = arith.divf %20, %21 : vector<8x128xf32>
    %23 = math.tanh %17 : vector<8x128xf32>
    %24 = vector.extract_strided_slice %22 {offsets = [0, 0], sizes = [8, 32], strides = [1, 1]} : vector<8x128xf32> to vector<8x32xf32>
    %25 = vector.extract_strided_slice %22 {offsets = [0, 32], sizes = [8, 32], strides = [1, 1]} : vector<8x128xf32> to vector<8x32xf32>
    %26 = vector.extract_strided_slice %22 {offsets = [0, 96], sizes = [8, 32], strides = [1, 1]} : vector<8x128xf32> to vector<8x32xf32>
    %27 = vector.extract_strided_slice %23 {offsets = [0, 64], sizes = [8, 32], strides = [1, 1]} : vector<8x128xf32> to vector<8x32xf32>
    %28 = arith.mulf %25, %13 : vector<8x32xf32>
    %29 = arith.mulf %24, %27 : vector<8x32xf32>
    %30 = arith.addf %28, %29 : vector<8x32xf32>
    %31 = math.tanh %30 : vector<8x32xf32>
    %32 = arith.mulf %26, %31 : vector<8x32xf32>
    %33 = vector.extract_strided_slice %11 {offsets = [0, 0, 0], sizes = [1, 8, 1], strides = [1, 1, 1]} : vector<7x8x1xi1> to vector<1x8x1xi1>
    %34 = vector.shape_cast %33 : vector<1x8x1xi1> to vector<8x1xi1>
    %35 = vector.shape_cast %34 : vector<8x1xi1> to vector<8x1xi1>
    %36 = vector.broadcast %35 : vector<8x1xi1> to vector<8x32xi1>
    %37 = arith.select %36, %32, %12 : vector<8x32xi1>, vector<8x32xf32>
    %38 = vector.shape_cast %34 : vector<8x1xi1> to vector<8x1xi1>
    %39 = vector.broadcast %38 : vector<8x1xi1> to vector<8x32xi1>
    %40 = arith.select %39, %30, %13 : vector<8x32xi1>, vector<8x32xf32>
    %41 = vector.extract_strided_slice %7 {offsets = [8, 0], sizes = [8, 128], strides = [1, 1]} : vector<56x128xf32> to vector<8x128xf32>
    %42 = arith.truncf %37 : vector<8x32xf32> to vector<8x32xbf16>
    %cst_13 = arith.constant dense<0.000000e+00> : vector<8x128xf32>
    %43 = tpu.matmul %42, %0, %cst_13 {dimension_numbers = #tpu.dot_dimension_numbers<[1], [0], [0], [1], [0, 0, 1, 1], [], []>} : vector<8x32xbf16>, vector<32x128xbf16>, vector<8x128xf32> -> vector<8x128xf32>
    %44 = arith.addf %41, %43 : vector<8x128xf32>
    %45 = arith.negf %44 : vector<8x128xf32>
    %46 = math.exp %45 : vector<8x128xf32>
    %cst_14 = arith.constant 1.000000e+00 : f32
    %47 = vector.broadcast %cst_14 : f32 to vector<8x128xf32>
    %48 = arith.addf %47, %46 : vector<8x128xf32>
    %49 = arith.divf %47, %48 : vector<8x128xf32>
    %50 = math.tanh %44 : vector<8x128xf32>
    %51 = vector.extract_strided_slice %49 {offsets = [0, 0], sizes = [8, 32], strides = [1, 1]} : vector<8x128xf32> to vector<8x32xf32>
    %52 = vector.extract_strided_slice %49 {offsets = [0, 32], sizes = [8, 32], strides = [1, 1]} : vector<8x128xf32> to vector<8x32xf32>
    %53 = vector.extract_strided_slice %49 {offsets = [0, 96], sizes = [8, 32], strides = [1, 1]} : vector<8x128xf32> to vector<8x32xf32>
    %54 = vector.extract_strided_slice %50 {offsets = [0, 64], sizes = [8, 32], strides = [1, 1]} : vector<8x128xf32> to vector<8x32xf32>
    %55 = arith.mulf %52, %40 : vector<8x32xf32>
    %56 = arith.mulf %51, %54 : vector<8x32xf32>
    %57 = arith.addf %55, %56 : vector<8x32xf32>
    %58 = math.tanh %57 : vector<8x32xf32>
    %59 = arith.mulf %53, %58 : vector<8x32xf32>
    %60 = vector.extract_strided_slice %11 {offsets = [1, 0, 0], sizes = [1, 8, 1], strides = [1, 1, 1]} : vector<7x8x1xi1> to vector<1x8x1xi1>
    %61 = vector.shape_cast %60 : vector<1x8x1xi1> to vector<8x1xi1>
    %62 = vector.shape_cast %61 : vector<8x1xi1> to vector<8x1xi1>
    %63 = vector.broadcast %62 : vector<8x1xi1> to vector<8x32xi1>
    %64 = arith.select %63, %59, %37 : vector<8x32xi1>, vector<8x32xf32>
    %65 = vector.shape_cast %61 : vector<8x1xi1> to vector<8x1xi1>
    %66 = vector.broadcast %65 : vector<8x1xi1> to vector<8x32xi1>
    %67 = arith.select %66, %57, %40 : vector<8x32xi1>, vector<8x32xf32>
    %68 = vector.extract_strided_slice %7 {offsets = [16, 0], sizes = [8, 128], strides = [1, 1]} : vector<56x128xf32> to vector<8x128xf32>
    %69 = arith.truncf %64 : vector<8x32xf32> to vector<8x32xbf16>
    %cst_15 = arith.constant dense<0.000000e+00> : vector<8x128xf32>
    %70 = tpu.matmul %69, %0, %cst_15 {dimension_numbers = #tpu.dot_dimension_numbers<[1], [0], [0], [1], [0, 0, 1, 1], [], []>} : vector<8x32xbf16>, vector<32x128xbf16>, vector<8x128xf32> -> vector<8x128xf32>
    %71 = arith.addf %68, %70 : vector<8x128xf32>
    %72 = arith.negf %71 : vector<8x128xf32>
    %73 = math.exp %72 : vector<8x128xf32>
    %cst_16 = arith.constant 1.000000e+00 : f32
    %74 = vector.broadcast %cst_16 : f32 to vector<8x128xf32>
    %75 = arith.addf %74, %73 : vector<8x128xf32>
    %76 = arith.divf %74, %75 : vector<8x128xf32>
    %77 = math.tanh %71 : vector<8x128xf32>
    %78 = vector.extract_strided_slice %76 {offsets = [0, 0], sizes = [8, 32], strides = [1, 1]} : vector<8x128xf32> to vector<8x32xf32>
    %79 = vector.extract_strided_slice %76 {offsets = [0, 32], sizes = [8, 32], strides = [1, 1]} : vector<8x128xf32> to vector<8x32xf32>
    %80 = vector.extract_strided_slice %76 {offsets = [0, 96], sizes = [8, 32], strides = [1, 1]} : vector<8x128xf32> to vector<8x32xf32>
    %81 = vector.extract_strided_slice %77 {offsets = [0, 64], sizes = [8, 32], strides = [1, 1]} : vector<8x128xf32> to vector<8x32xf32>
    %82 = arith.mulf %79, %67 : vector<8x32xf32>
    %83 = arith.mulf %78, %81 : vector<8x32xf32>
    %84 = arith.addf %82, %83 : vector<8x32xf32>
    %85 = math.tanh %84 : vector<8x32xf32>
    %86 = arith.mulf %80, %85 : vector<8x32xf32>
    %87 = vector.extract_strided_slice %11 {offsets = [2, 0, 0], sizes = [1, 8, 1], strides = [1, 1, 1]} : vector<7x8x1xi1> to vector<1x8x1xi1>
    %88 = vector.shape_cast %87 : vector<1x8x1xi1> to vector<8x1xi1>
    %89 = vector.shape_cast %88 : vector<8x1xi1> to vector<8x1xi1>
    %90 = vector.broadcast %89 : vector<8x1xi1> to vector<8x32xi1>
    %91 = arith.select %90, %86, %64 : vector<8x32xi1>, vector<8x32xf32>
    %92 = vector.shape_cast %88 : vector<8x1xi1> to vector<8x1xi1>
    %93 = vector.broadcast %92 : vector<8x1xi1> to vector<8x32xi1>
    %94 = arith.select %93, %84, %67 : vector<8x32xi1>, vector<8x32xf32>
    %95 = vector.extract_strided_slice %7 {offsets = [24, 0], sizes = [8, 128], strides = [1, 1]} : vector<56x128xf32> to vector<8x128xf32>
    %96 = arith.truncf %91 : vector<8x32xf32> to vector<8x32xbf16>
    %cst_17 = arith.constant dense<0.000000e+00> : vector<8x128xf32>
    %97 = tpu.matmul %96, %0, %cst_17 {dimension_numbers = #tpu.dot_dimension_numbers<[1], [0], [0], [1], [0, 0, 1, 1], [], []>} : vector<8x32xbf16>, vector<32x128xbf16>, vector<8x128xf32> -> vector<8x128xf32>
    %98 = arith.addf %95, %97 : vector<8x128xf32>
    %99 = arith.negf %98 : vector<8x128xf32>
    %100 = math.exp %99 : vector<8x128xf32>
    %cst_18 = arith.constant 1.000000e+00 : f32
    %101 = vector.broadcast %cst_18 : f32 to vector<8x128xf32>
    %102 = arith.addf %101, %100 : vector<8x128xf32>
    %103 = arith.divf %101, %102 : vector<8x128xf32>
    %104 = math.tanh %98 : vector<8x128xf32>
    %105 = vector.extract_strided_slice %103 {offsets = [0, 0], sizes = [8, 32], strides = [1, 1]} : vector<8x128xf32> to vector<8x32xf32>
    %106 = vector.extract_strided_slice %103 {offsets = [0, 32], sizes = [8, 32], strides = [1, 1]} : vector<8x128xf32> to vector<8x32xf32>
    %107 = vector.extract_strided_slice %103 {offsets = [0, 96], sizes = [8, 32], strides = [1, 1]} : vector<8x128xf32> to vector<8x32xf32>
    %108 = vector.extract_strided_slice %104 {offsets = [0, 64], sizes = [8, 32], strides = [1, 1]} : vector<8x128xf32> to vector<8x32xf32>
    %109 = arith.mulf %106, %94 : vector<8x32xf32>
    %110 = arith.mulf %105, %108 : vector<8x32xf32>
    %111 = arith.addf %109, %110 : vector<8x32xf32>
    %112 = math.tanh %111 : vector<8x32xf32>
    %113 = arith.mulf %107, %112 : vector<8x32xf32>
    %114 = vector.extract_strided_slice %11 {offsets = [3, 0, 0], sizes = [1, 8, 1], strides = [1, 1, 1]} : vector<7x8x1xi1> to vector<1x8x1xi1>
    %115 = vector.shape_cast %114 : vector<1x8x1xi1> to vector<8x1xi1>
    %116 = vector.shape_cast %115 : vector<8x1xi1> to vector<8x1xi1>
    %117 = vector.broadcast %116 : vector<8x1xi1> to vector<8x32xi1>
    %118 = arith.select %117, %113, %91 : vector<8x32xi1>, vector<8x32xf32>
    %119 = vector.shape_cast %115 : vector<8x1xi1> to vector<8x1xi1>
    %120 = vector.broadcast %119 : vector<8x1xi1> to vector<8x32xi1>
    %121 = arith.select %120, %111, %94 : vector<8x32xi1>, vector<8x32xf32>
    %122 = vector.extract_strided_slice %7 {offsets = [32, 0], sizes = [8, 128], strides = [1, 1]} : vector<56x128xf32> to vector<8x128xf32>
    %123 = arith.truncf %118 : vector<8x32xf32> to vector<8x32xbf16>
    %cst_19 = arith.constant dense<0.000000e+00> : vector<8x128xf32>
    %124 = tpu.matmul %123, %0, %cst_19 {dimension_numbers = #tpu.dot_dimension_numbers<[1], [0], [0], [1], [0, 0, 1, 1], [], []>} : vector<8x32xbf16>, vector<32x128xbf16>, vector<8x128xf32> -> vector<8x128xf32>
    %125 = arith.addf %122, %124 : vector<8x128xf32>
    %126 = arith.negf %125 : vector<8x128xf32>
    %127 = math.exp %126 : vector<8x128xf32>
    %cst_20 = arith.constant 1.000000e+00 : f32
    %128 = vector.broadcast %cst_20 : f32 to vector<8x128xf32>
    %129 = arith.addf %128, %127 : vector<8x128xf32>
    %130 = arith.divf %128, %129 : vector<8x128xf32>
    %131 = math.tanh %125 : vector<8x128xf32>
    %132 = vector.extract_strided_slice %130 {offsets = [0, 0], sizes = [8, 32], strides = [1, 1]} : vector<8x128xf32> to vector<8x32xf32>
    %133 = vector.extract_strided_slice %130 {offsets = [0, 32], sizes = [8, 32], strides = [1, 1]} : vector<8x128xf32> to vector<8x32xf32>
    %134 = vector.extract_strided_slice %130 {offsets = [0, 96], sizes = [8, 32], strides = [1, 1]} : vector<8x128xf32> to vector<8x32xf32>
    %135 = vector.extract_strided_slice %131 {offsets = [0, 64], sizes = [8, 32], strides = [1, 1]} : vector<8x128xf32> to vector<8x32xf32>
    %136 = arith.mulf %133, %121 : vector<8x32xf32>
    %137 = arith.mulf %132, %135 : vector<8x32xf32>
    %138 = arith.addf %136, %137 : vector<8x32xf32>
    %139 = math.tanh %138 : vector<8x32xf32>
    %140 = arith.mulf %134, %139 : vector<8x32xf32>
    %141 = vector.extract_strided_slice %11 {offsets = [4, 0, 0], sizes = [1, 8, 1], strides = [1, 1, 1]} : vector<7x8x1xi1> to vector<1x8x1xi1>
    %142 = vector.shape_cast %141 : vector<1x8x1xi1> to vector<8x1xi1>
    %143 = vector.shape_cast %142 : vector<8x1xi1> to vector<8x1xi1>
    %144 = vector.broadcast %143 : vector<8x1xi1> to vector<8x32xi1>
    %145 = arith.select %144, %140, %118 : vector<8x32xi1>, vector<8x32xf32>
    %146 = vector.shape_cast %142 : vector<8x1xi1> to vector<8x1xi1>
    %147 = vector.broadcast %146 : vector<8x1xi1> to vector<8x32xi1>
    %148 = arith.select %147, %138, %121 : vector<8x32xi1>, vector<8x32xf32>
    %149 = vector.extract_strided_slice %7 {offsets = [40, 0], sizes = [8, 128], strides = [1, 1]} : vector<56x128xf32> to vector<8x128xf32>
    %150 = arith.truncf %145 : vector<8x32xf32> to vector<8x32xbf16>
    %cst_21 = arith.constant dense<0.000000e+00> : vector<8x128xf32>
    %151 = tpu.matmul %150, %0, %cst_21 {dimension_numbers = #tpu.dot_dimension_numbers<[1], [0], [0], [1], [0, 0, 1, 1], [], []>} : vector<8x32xbf16>, vector<32x128xbf16>, vector<8x128xf32> -> vector<8x128xf32>
    %152 = arith.addf %149, %151 : vector<8x128xf32>
    %153 = arith.negf %152 : vector<8x128xf32>
    %154 = math.exp %153 : vector<8x128xf32>
    %cst_22 = arith.constant 1.000000e+00 : f32
    %155 = vector.broadcast %cst_22 : f32 to vector<8x128xf32>
    %156 = arith.addf %155, %154 : vector<8x128xf32>
    %157 = arith.divf %155, %156 : vector<8x128xf32>
    %158 = math.tanh %152 : vector<8x128xf32>
    %159 = vector.extract_strided_slice %157 {offsets = [0, 0], sizes = [8, 32], strides = [1, 1]} : vector<8x128xf32> to vector<8x32xf32>
    %160 = vector.extract_strided_slice %157 {offsets = [0, 32], sizes = [8, 32], strides = [1, 1]} : vector<8x128xf32> to vector<8x32xf32>
    %161 = vector.extract_strided_slice %157 {offsets = [0, 96], sizes = [8, 32], strides = [1, 1]} : vector<8x128xf32> to vector<8x32xf32>
    %162 = vector.extract_strided_slice %158 {offsets = [0, 64], sizes = [8, 32], strides = [1, 1]} : vector<8x128xf32> to vector<8x32xf32>
    %163 = arith.mulf %160, %148 : vector<8x32xf32>
    %164 = arith.mulf %159, %162 : vector<8x32xf32>
    %165 = arith.addf %163, %164 : vector<8x32xf32>
    %166 = math.tanh %165 : vector<8x32xf32>
    %167 = arith.mulf %161, %166 : vector<8x32xf32>
    %168 = vector.extract_strided_slice %11 {offsets = [5, 0, 0], sizes = [1, 8, 1], strides = [1, 1, 1]} : vector<7x8x1xi1> to vector<1x8x1xi1>
    %169 = vector.shape_cast %168 : vector<1x8x1xi1> to vector<8x1xi1>
    %170 = vector.shape_cast %169 : vector<8x1xi1> to vector<8x1xi1>
    %171 = vector.broadcast %170 : vector<8x1xi1> to vector<8x32xi1>
    %172 = arith.select %171, %167, %145 : vector<8x32xi1>, vector<8x32xf32>
    %173 = vector.shape_cast %169 : vector<8x1xi1> to vector<8x1xi1>
    %174 = vector.broadcast %173 : vector<8x1xi1> to vector<8x32xi1>
    %175 = arith.select %174, %165, %148 : vector<8x32xi1>, vector<8x32xf32>
    %176 = vector.extract_strided_slice %7 {offsets = [48, 0], sizes = [8, 128], strides = [1, 1]} : vector<56x128xf32> to vector<8x128xf32>
    %177 = arith.truncf %172 : vector<8x32xf32> to vector<8x32xbf16>
    %cst_23 = arith.constant dense<0.000000e+00> : vector<8x128xf32>
    %178 = tpu.matmul %177, %0, %cst_23 {dimension_numbers = #tpu.dot_dimension_numbers<[1], [0], [0], [1], [0, 0, 1, 1], [], []>} : vector<8x32xbf16>, vector<32x128xbf16>, vector<8x128xf32> -> vector<8x128xf32>
    %179 = arith.addf %176, %178 : vector<8x128xf32>
    %180 = arith.negf %179 : vector<8x128xf32>
    %181 = math.exp %180 : vector<8x128xf32>
    %cst_24 = arith.constant 1.000000e+00 : f32
    %182 = vector.broadcast %cst_24 : f32 to vector<8x128xf32>
    %183 = arith.addf %182, %181 : vector<8x128xf32>
    %184 = arith.divf %182, %183 : vector<8x128xf32>
    %185 = math.tanh %179 : vector<8x128xf32>
    %186 = vector.extract_strided_slice %184 {offsets = [0, 0], sizes = [8, 32], strides = [1, 1]} : vector<8x128xf32> to vector<8x32xf32>
    %187 = vector.extract_strided_slice %184 {offsets = [0, 32], sizes = [8, 32], strides = [1, 1]} : vector<8x128xf32> to vector<8x32xf32>
    %188 = vector.extract_strided_slice %184 {offsets = [0, 96], sizes = [8, 32], strides = [1, 1]} : vector<8x128xf32> to vector<8x32xf32>
    %189 = vector.extract_strided_slice %185 {offsets = [0, 64], sizes = [8, 32], strides = [1, 1]} : vector<8x128xf32> to vector<8x32xf32>
    %190 = arith.mulf %187, %175 : vector<8x32xf32>
    %191 = arith.mulf %186, %189 : vector<8x32xf32>
    %192 = arith.addf %190, %191 : vector<8x32xf32>
    %193 = math.tanh %192 : vector<8x32xf32>
    %194 = arith.mulf %188, %193 : vector<8x32xf32>
    %195 = vector.extract_strided_slice %11 {offsets = [6, 0, 0], sizes = [1, 8, 1], strides = [1, 1, 1]} : vector<7x8x1xi1> to vector<1x8x1xi1>
    %196 = vector.shape_cast %195 : vector<1x8x1xi1> to vector<8x1xi1>
    %197 = vector.shape_cast %196 : vector<8x1xi1> to vector<8x1xi1>
    %198 = vector.broadcast %197 : vector<8x1xi1> to vector<8x32xi1>
    %199 = arith.select %198, %194, %172 : vector<8x32xi1>, vector<8x32xf32>
    %200 = vector.shape_cast %196 : vector<8x1xi1> to vector<8x1xi1>
    %201 = vector.broadcast %200 : vector<8x1xi1> to vector<8x32xi1>
    %202 = arith.select %201, %192, %175 : vector<8x32xi1>, vector<8x32xf32>
    %c0_25 = arith.constant 0 : index
    %c0_26 = arith.constant 0 : index
    %203 = vector.load %arg9[%c0_25, %c0_26] : memref<8x32xf32, #tpu.memory_space<vmem>>, vector<8x32xf32>
    tpu.vector_store %arg9[%c0_25, %c0_26], %199 {strides = array<i32>} : memref<8x32xf32, #tpu.memory_space<vmem>>, vector<8x32xf32>,
    %c0_27 = arith.constant 0 : index
    %c0_28 = arith.constant 0 : index
    %204 = vector.load %arg10[%c0_27, %c0_28] : memref<8x32xf32, #tpu.memory_space<vmem>>, vector<8x32xf32>
    tpu.vector_store %arg10[%c0_27, %c0_28], %202 {strides = array<i32>} : memref<8x32xf32, #tpu.memory_space<vmem>>, vector<8x32xf32>,
    %205 = arith.truncf %199 : vector<8x32xf32> to vector<8x32xbf16>
    %c0_29 = arith.constant 0 : index
    %c0_30 = arith.constant 0 : index
    %206 = vector.load %arg7[%c0_29, %c0_30] : memref<32x10xbf16, #tpu.memory_space<vmem>>, vector<32x10xbf16>
    %cst_31 = arith.constant dense<0.000000e+00> : vector<8x10xf32>
    %207 = tpu.matmul %205, %206, %cst_31 {dimension_numbers = #tpu.dot_dimension_numbers<[1], [0], [0], [1], [0, 0, 1, 1], [], []>} : vector<8x32xbf16>, vector<32x10xbf16>, vector<8x10xf32> -> vector<8x10xf32>
    %c0_32 = arith.constant 0 : index
    %c0_33 = arith.constant 0 : index
    %208 = vector.load %arg8[%c0_32, %c0_33] : memref<1x10xf32, #tpu.memory_space<vmem>>, vector<1x10xf32>
    %209 = vector.broadcast %208 : vector<1x10xf32> to vector<8x10xf32>
    %210 = arith.addf %207, %209 : vector<8x10xf32>
    %c0_34 = arith.constant 0 : index
    %c0_35 = arith.constant 0 : index
    %211 = vector.load %arg11[%c0_34, %c0_35] : memref<8x10xf32, #tpu.memory_space<vmem>>, vector<8x10xf32>
    tpu.vector_store %arg11[%c0_34, %c0_35], %210 {strides = array<i32>} : memref<8x10xf32, #tpu.memory_space<vmem>>, vector<8x10xf32>,
    %c0_36 = arith.constant 0 : index
    %c0_37 = arith.constant 0 : index
    %212 = vector.load %arg3[%c0_36, %c0_37] : memref<8x1xi32, #tpu.memory_space<vmem>>, vector<8x1xi32>
    %213 = tpu.iota {dimensions = array<i32: 1>} : vector<8x10xi32>
    %214 = vector.broadcast %212 : vector<8x1xi32> to vector<8x10xi32>
    %215 = arith.cmpi eq, %213, %214 : vector<8x10xi32>
    %216 = arith.extui %215 : vector<8x10xi1> to vector<8x10xi32>
    %217 = arith.sitofp %216 : vector<8x10xi32> to vector<8x10xf32>
    %cst_38 = arith.constant dense<0xFF800000> : vector<8xf32>
    %218 = vector.multi_reduction <maximumf>, %210, %cst_38 [1] : vector<8x10xf32> to vector<8xf32>
    %219 = vector.shape_cast %218 : vector<8xf32> to vector<8x1xf32>
    %220 = vector.broadcast %219 : vector<8x1xf32> to vector<8x10xf32>
    %221 = arith.subf %210, %220 : vector<8x10xf32>
    %222 = math.exp %221 : vector<8x10xf32>
    %cst_39 = arith.constant dense<0.000000e+00> : vector<8xf32>
    %223 = vector.multi_reduction <add>, %222, %cst_39 [1] : vector<8x10xf32> to vector<8xf32>
    %224 = vector.shape_cast %223 : vector<8xf32> to vector<8x1xf32>
    %225 = math.log %224 : vector<8x1xf32>
    %226 = arith.addf %219, %225 : vector<8x1xf32>
    %227 = arith.mulf %210, %217 : vector<8x10xf32>
    %cst_40 = arith.constant dense<0.000000e+00> : vector<8xf32>
    %228 = vector.multi_reduction <add>, %227, %cst_40 [1] : vector<8x10xf32> to vector<8xf32>
    %229 = vector.shape_cast %228 : vector<8xf32> to vector<8x1xf32>
    %230 = arith.subf %226, %229 : vector<8x1xf32>
    %231 = vector.shape_cast %230 : vector<8x1xf32> to vector<1x8x1xf32>
    %cst_41 = arith.constant dense<0.000000e+00> : vector<1xf32>
    %232 = vector.multi_reduction <add>, %231, %cst_41 [1, 2] : vector<1x8x1xf32> to vector<1xf32>
    %233 = vector.shape_cast %232 : vector<1xf32> to vector<1x1x1xf32>
    %234 = vector.extract %233[0, 0, 0] : f32 from vector<1x1x1xf32>
    %cst_42 = arith.constant 1.250000e-01 : f32
    %235 = arith.mulf %234, %cst_42 : f32
    %c0_43 = arith.constant 0 : index
    %c0_44 = arith.constant 0 : index
    %236 = memref.load %arg12[%c0_43, %c0_44] : memref<1x1xf32, #tpu.memory_space<smem>>
    memref.store %235, %arg12[%c0_43, %c0_44] : memref<1x1xf32, #tpu.memory_space<smem>>
    %237 = vector.broadcast %219 : vector<8x1xf32> to vector<8x10xf32>
    %238 = arith.cmpf oeq, %210, %237 : vector<8x10xf32>
    %c10_i32 = arith.constant 10 : i32
    %239 = vector.broadcast %c10_i32 : i32 to vector<8x10xi32>
    %240 = arith.select %238, %213, %239 : vector<8x10xi1>, vector<8x10xi32>
    %cst_45 = arith.constant dense<2147483647> : vector<8xi32>
    %241 = vector.multi_reduction <minsi>, %240, %cst_45 [1] : vector<8x10xi32> to vector<8xi32>
    %242 = vector.shape_cast %241 : vector<8xi32> to vector<8x1xi32>
    %243 = arith.cmpi eq, %242, %212 : vector<8x1xi32>
    %244 = arith.extui %243 : vector<8x1xi1> to vector<8x1xi32>
    %245 = vector.shape_cast %244 : vector<8x1xi32> to vector<1x8x1xi32>
    %cst_46 = arith.constant dense<0> : vector<1xi32>
    %246 = vector.multi_reduction <add>, %245, %cst_46 [1, 2] : vector<1x8x1xi32> to vector<1xi32>
    %247 = vector.shape_cast %246 : vector<1xi32> to vector<1x1x1xi32>
    %248 = vector.extract %247[0, 0, 0] : i32 from vector<1x1x1xi32>
    %c0_47 = arith.constant 0 : index
    %c0_48 = arith.constant 0 : index
    %249 = memref.load %arg13[%c0_47, %c0_48] : memref<1x1xi32, #tpu.memory_space<smem>>
    memref.store %248, %arg13[%c0_47, %c0_48] : memref<1x1xi32, #tpu.memory_space<smem>>
    return
  }
  func.func @transform_0(%arg0: i32) -> (i32, i32) {
    %c0_i32 = arith.constant 0 : i32
    %c0_i32_0 = arith.constant 0 : i32
    %c0_i32_1 = arith.constant 0 : i32
    return %c0_i32, %c0_i32_0 : i32, i32
  }
  func.func @transform_1(%arg0: i32) -> (i32, i32) {
    %c0_i32 = arith.constant 0 : i32
    %c0_i32_0 = arith.constant 0 : i32
    %c0_i32_1 = arith.constant 0 : i32
    return %c0_i32, %c0_i32_0 : i32, i32
  }
  func.func @transform_2(%arg0: i32) -> (i32, i32) {
    %c0_i32 = arith.constant 0 : i32
    %c0_i32_0 = arith.constant 0 : i32
    %c0_i32_1 = arith.constant 0 : i32
    return %c0_i32, %c0_i32_0 : i32, i32
  }
  func.func @transform_3(%arg0: i32) -> (i32, i32) {
    %c0_i32 = arith.constant 0 : i32
    %c0_i32_0 = arith.constant 0 : i32
    %c0_i32_1 = arith.constant 0 : i32
    return %c0_i32, %c0_i32_0 : i32, i32
  }
  func.func @transform_4(%arg0: i32) -> (i32, i32) {
    %c0_i32 = arith.constant 0 : i32
    %c0_i32_0 = arith.constant 0 : i32
    %c0_i32_1 = arith.constant 0 : i32
    return %c0_i32, %c0_i32_0 : i32, i32
  }
  func.func @transform_5(%arg0: i32) -> (i32, i32) {
    %c0_i32 = arith.constant 0 : i32
    %c0_i32_0 = arith.constant 0 : i32
    %c0_i32_1 = arith.constant 0 : i32
    return %c0_i32, %c0_i32_0 : i32, i32
  }
  func.func @transform_6(%arg0: i32) -> (i32, i32) {
    %c0_i32 = arith.constant 0 : i32
    %c0_i32_0 = arith.constant 0 : i32
    %c0_i32_1 = arith.constant 0 : i32
    return %c0_i32, %c0_i32_0 : i32, i32
  }
  func.func @transform_7(%arg0: i32) -> (i32, i32) {
    %c0_i32 = arith.constant 0 : i32
    %c0_i32_0 = arith.constant 0 : i32
    %c0_i32_1 = arith.constant 0 : i32
    return %c0_i32, %c0_i32_0 : i32, i32
  }
  func.func @transform_8(%arg0: i32) -> (i32, i32) {
    %c0_i32 = arith.constant 0 : i32
    %c0_i32_0 = arith.constant 0 : i32
    %c0_i32_1 = arith.constant 0 : i32
    return %c0_i32, %c0_i32_0 : i32, i32
  }
  func.func @transform_9(%arg0: i32) -> (i32, i32) {
    %c0_i32 = arith.constant 0 : i32
    %c0_i32_0 = arith.constant 0 : i32
    %c0_i32_1 = arith.constant 0 : i32
    return %c0_i32, %c0_i32_0 : i32, i32
  }
  func.func @transform_10(%arg0: i32) -> (i32, i32) {
    %c0_i32 = arith.constant 0 : i32
    %c0_i32_0 = arith.constant 0 : i32
    %c0_i32_1 = arith.constant 0 : i32
    return %c0_i32, %c0_i32_0 : i32, i32
  }
  func.func @transform_11(%arg0: i32) -> (i32, i32) {
    %c0_i32 = arith.constant 0 : i32
    %c0_i32_0 = arith.constant 0 : i32
    %c0_i32_1 = arith.constant 0 : i32
    return %c0_i32, %c0_i32_0 : i32, i32
  }
  func.func @transform_12(%arg0: i32) -> (i32, i32) {
    %c0_i32 = arith.constant 0 : i32
    %c0_i32_0 = arith.constant 0 : i32
    %c0_i32_1 = arith.constant 0 : i32
    return %c0_i32, %c0_i32_0 : i32, i32
  }
}

</mosaic_0001>

<bundles_post_ra>
// kernel: seq_lstm_classify_forward.1
= control target key start
LH: loop header
LB: loop body
LE: loop exit
PB: predicated region body
PF: predicated region fallthrough
CT: control target
= control target key end

     0   :  { %18 = vsyncpa [#allocation3], 0  ;;  %s1635_s0 = inlined_call_operand.vmem [shape: bf16[56,16], index: 0, kind: input, shape index: {}]   ;;  %s1636_s1 = inlined_call_operand.vmem [shape: s32[8,1], index: 1, kind: input, shape index: {}]   ;;  %s1637_s2 = inlined_call_operand.vmem [shape: s32[8,1], index: 2, kind: input, shape index: {}]   ;;  %s1638_s3 = inlined_call_operand.vmem [shape: bf16[16,128], index: 3, kind: input, shape index: {}]   ;;  %s1639_s4 = inlined_call_operand.vmem [shape: bf16[32,128], index: 4, kind: input, shape index: {}]   ;;  %s1640_s5 = inlined_call_operand.vmem [shape: f32[1,128], index: 5, kind: input, shape index: {}]   ;;  %s1641_s6 = inlined_call_operand.vmem [shape: bf16[32,10], index: 6, kind: input, shape index: {}]   ;;  %s1642_s7 = inlined_call_operand.vmem [shape: f32[1,10], index: 7, kind: input, shape index: {}]   ;;  %s1643_s8 = inlined_call_operand.hbm [shape: f32[8,32], index: 8, kind: output, shape index: {0}]   ;;  %s1644_s9 = inlined_call_operand.hbm [shape: f32[8,32], index: 9, kind: output, shape index: {1}]   ;;  %s1645_s10 = inlined_call_operand.hbm [shape: f32[8,10], index: 10, kind: output, shape index: {2}]   ;;  %s1646_s11 = inlined_call_operand.hbm [shape: f32[1,1], index: 11, kind: output, shape index: {3}]   ;;  %s1647_s12 = inlined_call_operand.hbm [shape: s32[1,1], index: 12, kind: output, shape index: {4}]  }
   0x1   :  { %19 = vsyncpa [#allocation6], 0 }
   0x2   :  { %20 = vsyncpa [#allocation4], 0  ;;  %v1109_v0 = vld [vmem:[%s1638_s3] sm:$0xff]   ;;  %v1272_v1 = vmov 0.0   ;;  %vm84_vm0 = vcmask 130048   ;;  %v1112_v4 = vld [vmem:[%s1635_s0 + $0x8] sm:$0xff]  }
   0x3   :  { %1028 = vmatprep.subr.bf16.mxu1 %v1272_v1  ;;  %v1355_v2 = vld [vmem:[%s1639_s4] sm:$0xff]   ;;  %1018 = vmatprep.subr.bf16.mxu0 %v1109_v0  ;;  %v1369_v5 = vld [vmem:[%s1639_s4 + $0x8] sm:$0xff]   ;;  %vm1273_vm1 = vmmov 0   ;;  %v1274_v6 = vmov 0  }
   0x4   :  { %v1111_v3 = vld [vmem:[%s1635_s0] sm:$0xff]   ;;  %1029 = vmatpush3.bf16.msra.mxu1 %v1355_v2  ;;  %1019 = vmatpush3.bf16.msra.mxu0 %v1109_v0 }
   0x5   :  { %1020 = vmatprep.mubr.msk.bf16.mxu0 %vm84_vm0, %v1111_v3  ;;  %1030 = vmatprep.subr.bf16.mxu1 %v1272_v1 }
   0x6   :  { %1032 = vmatprep.mubr.msk.bf16.mxu1 %vm1273_vm1, %v1272_v1  ;;  %1107 = vset.pattern.permute.xlu1 %v1274_v6 }
   0x7   :  { %1021 = vmatmul.mubr.msk.bf16.vlgmr.msra.gmra.mrb[0].mxu0 %vm84_vm0, %v1112_v4  ;;  %1044 = vmatprep.subr.bf16.mxu0 %v1272_v1 }
   0x8   :  { %1031 = vmatpush3.bf16.msra.mxu1 %v1369_v5  ;;  %1045 = vmatpush3.bf16.msra.mxu0 %v1355_v2 }
   0x9   :  { %21 = vsyncpa [#allocation10], 0  ;;  %1036 = vmatprep.subr.bf16.mxu1 %v1272_v1  ;;  %1046 = vmatprep.subr.bf16.mxu0 %v1272_v1  ;;  %v1393_v7 = vld [vmem:[%s1636_s1] sm:$0xff]  ;;  %s1275_s1 = smov 64   ;;  %vm180_vm4 = vcmask 261120   ;;  %v1114_v55 = vld [vmem:[%s1635_s0 + $0x10] sm:$0xff]  }
   0xa   :  { %1108 = vset.pattern.permute.xlu0 %v1274_v6  ;;  %vm161_vm2 = vcmp.gt.s32.totalorder %v1393_v7, 0  ;;  %v1400_v9 = vld [vmem:[%s1640_s5] ss:$0 sm:$0xff]  ;;  %s1276_s5 = smov 32   ;;  %vm162_vm5 = vcmp.gt.s32.totalorder %v1393_v7, 1  ;;  %1024 = vmatprep.mubr.msk.bf16.mxu0 %vm84_vm0, %v1114_v55  ;;  %vm163_vm7 = vcmp.gt.s32.totalorder %v1393_v7, 2 }
   0xb   :  { %1033 = vmatmul.mubr.bf16.vlgmr.msra.gmra.mrb[0].mxu1 %v1274_v6  ;;  %v249_v8 = vsel %vm161_vm2, 1, %v1274_v6  ;;  %v328_v44 = vsel %vm162_vm5, 1, %v1274_v6  ;;  %v1115_v56 = vld [vmem:[%s1635_s0 + $0x18] ss:$0 sps:$4 sm:$0xff]   ;;  %vm164_vm9 = vcmp.gt.s32.totalorder %v1393_v7, 3  ;;  %vm165_vm11 = vcmp.gt.s32.totalorder %v1393_v7, 4 }
   0xc   :  { %1037 = vmatpush3.bf16.msra.mxu1 %v1355_v2  ;;  %1040 = vmatprep.mubr.msk.bf16.mxu1 %vm1273_vm1, %v1272_v1  ;;  %vm166_vm13 = vcmp.gt.s32.totalorder %v1393_v7, 5  ;;  %vm167_vm15 = vcmp.gt.s32.totalorder %v1393_v7, 6  ;;  %s1279_s26 = smov [#allocation7]   ;;  %s1280_s28 = smov [#allocation2]  }
   0xd   :  { %1038 = vmatprep.subr.bf16.mxu1 %v1272_v1  ;;  %1047 = vmatpush3.bf16.msra.mxu0 %v1369_v5  ;;  %s919_s27 = sshll.u32 %s1279_s26, 4  ;;  %s899_s3 = sshll.u32 %s1280_s28, 4  ;;  %s1559_s27 = int_to_ptr.vmem [resolvable:$true] %s919_s27  ;;  %s1562_s3 = int_to_ptr.vmem [resolvable:$true] %s899_s3 }
   0xe   :  { %1060 = vmatprep.subr.bf16.mxu0 %v1272_v1  ;;  %251 = vperm.xlu1 %1107, %v249_v8  }
   0xf   :  { %1025 = vmatmul.mubr.msk.bf16.gmra.mrb[4].mxu0 %vm84_vm0, %v1115_v56 }
  0x10   :  { %1039 = vmatpush3.bf16.msra.mxu1 %v1369_v5  ;;  %1048 = vmatprep.mubr.msk.bf16.mxu0 %vm1273_vm1, %v1272_v1 }
  0x11   :  { %1052 = vmatprep.subr.bf16.mxu1 %v1272_v1 }
  0x8d   :  { %v252_v31 = vpop.permute.xlu1 %251 }
  0x8e   :  { %vm253_vm3 = vcmp.eq.s32.totalorder %v252_v31, 1 }
  0xda   :  { %v1402_v10 = vpop.f32.mrb[0].mxu0 }
  0xdb   :  { %v131_v11 = vpop.f32.mrb[1].mxu0 }
  0xdc   :  { %v132_v12 = vadd.f32 %v1400_v9, %v131_v11  ;;  %v1405_v13 = vpop.f32.mrb[2].mxu0  ;;  %v140_v11 = vadd.f32 %v1402_v10, %v1400_v9 }
  0xdd   :  { %v134_v14 = vpop.f32.mrb[3].mxu0 }
  0xde   :  { %v218_v15 = vpop.f32.mrb[0].mxu1  ;;  %v135_v37 = vadd.f32 %v1400_v9, %v134_v14 }
  0xdf   :  { %v224_v16 = vadd.f32 %v218_v15, %v132_v12  ;;  %v1034_v17 = vpop.f32.mrb[1].mxu1 }
  0xe0   :  { %v221_v18 = vpop.f32.mrb[2].mxu1 }
  0xe1   :  { %1118 = vtanh.f32 %v224_v16  ;;  %v1035_v19 = vpop.f32.mrb[3].mxu1  ;;  %v971_v21 = vmul.f32 -1.442695, %v224_v16 }
  0xe2   :  { %v1438_v63 = vpop.f32.mrb[4].mxu0  ;;  %v407_v19 = vsel %vm163_vm7, 1, %v1274_v6 }
  0xe3   :  { %1120 = vpow2.f32 %v971_v21  ;;  %v1440_v0 = vpop.f32.mrb[5].mxu0 }
  0xe4   :  { %v1027_v3 = vpop.f32.mrb[6].mxu0 }
  0xe5   :  { %v1442_v4 = vpop.f32.mrb[7].mxu0 }
  0xeb   :  { %v1119_v20 = vpop.eup %1118 }
  0xec   :  { %234 = vrot.lane.b32.xlu0 %v1119_v20, %s1275_s1 }
  0xed   :  { %v1121_v22 = vpop.eup %1120 }
  0xee   :  { %v228_v23 = vadd.f32 1.0, %v1121_v22 }
  0xf0   :  { %1122 = vrcp.f32 %v228_v23 }
  0xfa   :  { %v1123_v24 = vpop.eup %1122 }
  0xfb   :  { %v232_v27 = vmul.f32 0.0, %v1123_v24 }
 0x15e   :  { %v235_v25 = vpop.permute.xlu0 %234 }
 0x15f   :  { %v237_v26 = vmul.f32 %v1123_v24, %v235_v25 }
 0x161   :  { %239 = vrot.lane.b32.xlu0 %v237_v26, %s1276_s5 }
 0x1d3   :  { %v240_v28 = vpop.permute.xlu0 %239 }
 0x1d4   :  { %v242_v29 = vadd.f32 %v240_v28, %v232_v27 }
 0x1d6   :  { %1124 = vtanh.f32 %v242_v29  ;;  %v255_v51 = vsel %vm253_vm3, %v242_v29, 0.0 }
 0x1e0   :  { %v1125_v30 = vpop.eup %1124 }
 0x1e1   :  { %245 = vrot.lane.b32.xlu1 %v1125_v30, %s1275_s1 }
 0x253   :  { %v246_v32 = vpop.permute.xlu1 %245 }
 0x254   :  { %v248_v33 = vmul.f32 %v1123_v24, %v246_v32 }
 0x256   :  { %v254_v34 = vsel %vm253_vm3, %v248_v33, 0.0 }
 0x257   :  { %v256_v35 = vpack.c.bf16 %v254_v34, %v254_v34 }
 0x259   :  { %258 = vrot.lane.b32.xlu0 %v256_v35, %s1276_s5 }
 0x2cb   :  { %v259_v36 = vpop.permute.xlu0 %258 }
 0x2cc   :  { %1041 = vmatmul.mubr.msk.bf16.vlgmr.msra.gmra.mrb[4].mxu1 %vm180_vm4, %v259_v36  ;;  %v143_v36 = vadd.f32 %v1405_v13, %v1400_v9 }
 0x2cd   :  { %1053 = vmatpush3.bf16.msra.mxu1 %v1355_v2  ;;  %1056 = vmatprep.mubr.msk.bf16.mxu1 %vm1273_vm1, %v1272_v1 }
 0x2ce   :  { %1054 = vmatprep.subr.bf16.mxu1 %v1272_v1 }
 0x2d1   :  { %1055 = vmatpush3.bf16.msra.mxu1 %v1369_v5 }
 0x2d2   :  { %1068 = vmatprep.subr.bf16.mxu1 %v1272_v1 }
 0x39f   :  { %v297_v38 = vpop.f32.mrb[4].mxu1 }
 0x3a0   :  { %v303_v39 = vadd.f32 %v297_v38, %v135_v37  ;;  %v1042_v40 = vpop.f32.mrb[5].mxu1 }
 0x3a1   :  { %v300_v41 = vpop.f32.mrb[6].mxu1 }
 0x3a2   :  { %1126 = vtanh.f32 %v303_v39  ;;  %v1043_v42 = vpop.f32.mrb[7].mxu1  ;;  %v973_v45 = vmul.f32 -1.442695, %v303_v39 }
 0x3a4   :  { %1128 = vpow2.f32 %v973_v45 }
 0x3ac   :  { %v1127_v43 = vpop.eup %1126 }
 0x3ad   :  { %313 = vrot.lane.b32.xlu1 %v1127_v43, %s1275_s1  ;;  %v486_v43 = vsel %vm164_vm9, 1, %v1274_v6 }
 0x3ae   :  { %v1129_v46 = vpop.eup %1128 }
 0x3af   :  { %v307_v47 = vadd.f32 1.0, %v1129_v46 }
 0x3b1   :  { %330 = vperm.xlu1 %1107, %v328_v44   ;;  %1130 = vrcp.f32 %v307_v47 }
 0x3bb   :  { %v1131_v48 = vpop.eup %1130 }
 0x3bc   :  { %v311_v52 = vmul.f32 %v1131_v48, %v255_v51 }
 0x41f   :  { %v314_v49 = vpop.permute.xlu1 %313 }
 0x420   :  { %v316_v50 = vmul.f32 %v1131_v48, %v314_v49 }
 0x422   :  { %318 = vrot.lane.b32.xlu0 %v316_v50, %s1276_s5 }
 0x430   :  { %v331_v58 = vpop.permute.xlu1 %330 }
 0x431   :  { %vm332_vm6 = vcmp.eq.s32.totalorder %v331_v58, 1 }
 0x494   :  { %v319_v53 = vpop.permute.xlu0 %318 }
 0x495   :  { %v321_v54 = vadd.f32 %v319_v53, %v311_v52 }
 0x497   :  { %1132 = vtanh.f32 %v321_v54  ;;  %v334_v25 = vsel %vm332_vm6, %v321_v54, %v255_v51 }
 0x4a1   :  { %v1133_v57 = vpop.eup %1132 }
 0x4a2   :  { %324 = vrot.lane.b32.xlu0 %v1133_v57, %s1275_s1 }
 0x514   :  { %v325_v59 = vpop.permute.xlu0 %324 }
 0x515   :  { %v327_v60 = vmul.f32 %v1131_v48, %v325_v59 }
 0x517   :  { %v333_v61 = vsel %vm332_vm6, %v327_v60, %v254_v34  ;;  %v148_v60 = vadd.f32 %v1400_v9, %v1440_v0  ;;  %vm838_vm6 = vcmask 7168  }
 0x518   :  { %v335_v62 = vpack.c.bf16 %v333_v61, %v333_v61 }
 0x51a   :  { %337 = vrot.lane.b32.xlu1 %v335_v62, %s1276_s5 }
 0x58c   :  { %v338_v8 = vpop.permute.xlu1 %337 }
 0x58d   :  { %1049 = vmatmul.mubr.msk.bf16.vlgmr.msra.gmra.mrb[8].mxu0 %vm180_vm4, %v338_v8 }
 0x58e   :  { %1061 = vmatpush3.bf16.msra.mxu0 %v1355_v2  ;;  %1064 = vmatprep.mubr.msk.bf16.mxu0 %vm1273_vm1, %v1272_v1 }
 0x58f   :  { %1062 = vmatprep.subr.bf16.mxu0 %v1272_v1 }
 0x592   :  { %1063 = vmatpush3.bf16.msra.mxu0 %v1369_v5 }
 0x593   :  { %1076 = vmatprep.subr.bf16.mxu0 %v1272_v1 }
 0x660   :  { %v376_v12 = vpop.f32.mrb[8].mxu0 }
 0x661   :  { %v382_v14 = vadd.f32 %v376_v12, %v140_v11  ;;  %v1050_v15 = vpop.f32.mrb[9].mxu0 }
 0x662   :  { %v379_v16 = vpop.f32.mrb[10].mxu0 }
 0x663   :  { %1134 = vtanh.f32 %v382_v14  ;;  %v1051_v17 = vpop.f32.mrb[11].mxu0  ;;  %v975_v20 = vmul.f32 -1.442695, %v382_v14 }
 0x665   :  { %1136 = vpow2.f32 %v975_v20 }
 0x66d   :  { %v1135_v18 = vpop.eup %1134 }
 0x66e   :  { %392 = vrot.lane.b32.xlu0 %v1135_v18, %s1275_s1 }
 0x66f   :  { %v1137_v21 = vpop.eup %1136 }
 0x670   :  { %v386_v22 = vadd.f32 1.0, %v1137_v21 }
 0x672   :  { %409 = vperm.xlu0 %1108, %v407_v19   ;;  %1138 = vrcp.f32 %v386_v22 }
 0x67c   :  { %v1139_v10 = vpop.eup %1138 }
 0x67d   :  { %v390_v26 = vmul.f32 %v1139_v10, %v334_v25 }
 0x6e0   :  { %v393_v23 = vpop.permute.xlu0 %392 }
 0x6e1   :  { %v395_v24 = vmul.f32 %v1139_v10, %v393_v23 }
 0x6e3   :  { %397 = vrot.lane.b32.xlu1 %v395_v24, %s1276_s5 }
 0x6f1   :  { %v410_v30 = vpop.permute.xlu0 %409 }
 0x6f2   :  { %vm411_vm8 = vcmp.eq.s32.totalorder %v410_v30, 1 }
 0x755   :  { %v398_v27 = vpop.permute.xlu1 %397 }
 0x756   :  { %v400_v28 = vadd.f32 %v398_v27, %v390_v26 }
 0x758   :  { %1140 = vtanh.f32 %v400_v28  ;;  %v413_v49 = vsel %vm411_vm8, %v400_v28, %v334_v25  ;;  %v151_v28 = vadd.f32 %v1400_v9, %v1442_v4 }
 0x762   :  { %v1141_v29 = vpop.eup %1140 }
 0x763   :  { %403 = vrot.lane.b32.xlu1 %v1141_v29, %s1275_s1 }
 0x7d5   :  { %v404_v31 = vpop.permute.xlu1 %403 }
 0x7d6   :  { %v406_v32 = vmul.f32 %v1139_v10, %v404_v31 }
 0x7d8   :  { %v412_v33 = vsel %vm411_vm8, %v406_v32, %v333_v61 }
 0x7d9   :  { %v414_v34 = vpack.c.bf16 %v412_v33, %v412_v33 }
 0x7db   :  { %416 = vrot.lane.b32.xlu1 %v414_v34, %s1276_s5 }
 0x84d   :  { %v417_v35 = vpop.permute.xlu1 %416 }
 0x84e   :  { %1057 = vmatmul.mubr.msk.bf16.vlgmr.msra.gmra.mrb[8].mxu1 %vm180_vm4, %v417_v35  ;;  %v644_v35 = vsel %vm166_vm13, 1, %v1274_v6 }
 0x84f   :  { %1069 = vmatpush3.bf16.msra.mxu1 %v1355_v2  ;;  %1072 = vmatprep.mubr.msk.bf16.mxu1 %vm1273_vm1, %v1272_v1 }
 0x850   :  { %1070 = vmatprep.subr.bf16.mxu1 %v1272_v1 }
 0x853   :  { %1071 = vmatpush3.bf16.msra.mxu1 %v1369_v5 }
 0x854   :  { %1084 = vmatprep.subr.bf16.mxu1 %v1272_v1 }
 0x921   :  { %v455_v37 = vpop.f32.mrb[8].mxu1 }
 0x922   :  { %v461_v38 = vadd.f32 %v455_v37, %v143_v36  ;;  %v1058_v39 = vpop.f32.mrb[9].mxu1 }
 0x923   :  { %v458_v40 = vpop.f32.mrb[10].mxu1 }
 0x924   :  { %1142 = vtanh.f32 %v461_v38  ;;  %v1059_v41 = vpop.f32.mrb[11].mxu1  ;;  %v977_v44 = vmul.f32 -1.442695, %v461_v38 }
 0x926   :  { %1144 = vpow2.f32 %v977_v44 }
 0x92e   :  { %v1143_v42 = vpop.eup %1142 }
 0x92f   :  { %471 = vrot.lane.b32.xlu0 %v1143_v42, %s1275_s1 }
 0x930   :  { %v1145_v45 = vpop.eup %1144 }
 0x931   :  { %v465_v46 = vadd.f32 1.0, %v1145_v45 }
 0x933   :  { %488 = vperm.xlu0 %1108, %v486_v43   ;;  %1146 = vrcp.f32 %v465_v46 }
 0x93d   :  { %v1147_v13 = vpop.eup %1146 }
 0x93e   :  { %v469_v50 = vmul.f32 %v1147_v13, %v413_v49 }
 0x9a1   :  { %v472_v47 = vpop.permute.xlu0 %471 }
 0x9a2   :  { %v474_v48 = vmul.f32 %v1147_v13, %v472_v47 }
 0x9a4   :  { %476 = vrot.lane.b32.xlu1 %v474_v48, %s1276_s5 }
 0x9b2   :  { %v489_v54 = vpop.permute.xlu0 %488 }
 0x9b3   :  { %vm490_vm10 = vcmp.eq.s32.totalorder %v489_v54, 1 }
 0xa16   :  { %v477_v51 = vpop.permute.xlu1 %476 }
 0xa17   :  { %v479_v52 = vadd.f32 %v477_v51, %v469_v50  ;;  %v156_v51 = vadd.f32 %v1438_v63, %v1400_v9 }
 0xa19   :  { %1148 = vtanh.f32 %v479_v52  ;;  %v492_v18 = vsel %vm490_vm10, %v479_v52, %v413_v49 }
 0xa23   :  { %v1149_v53 = vpop.eup %1148 }
 0xa24   :  { %482 = vrot.lane.b32.xlu1 %v1149_v53, %s1275_s1 }
 0xa96   :  { %v483_v55 = vpop.permute.xlu1 %482 }
 0xa97   :  { %v485_v56 = vmul.f32 %v1147_v13, %v483_v55 }
 0xa99   :  { %v491_v57 = vsel %vm490_vm10, %v485_v56, %v412_v33 }
 0xa9a   :  { %v493_v58 = vpack.c.bf16 %v491_v57, %v491_v57 }
 0xa9c   :  { %495 = vrot.lane.b32.xlu0 %v493_v58, %s1276_s5  ;;  %v723_v58 = vsel %vm167_vm15, 1, %v1274_v6 }
 0xb0e   :  { %v496_v59 = vpop.permute.xlu0 %495 }
 0xb0f   :  { %1065 = vmatmul.mubr.msk.bf16.vlgmr.msra.gmra.mrb[12].mxu0 %vm180_vm4, %v496_v59 }
 0xb10   :  { %1077 = vmatpush3.bf16.msra.mxu0 %v1355_v2  ;;  %1080 = vmatprep.mubr.msk.bf16.mxu0 %vm1273_vm1, %v1272_v1  ;;  %v565_v2 = vsel %vm165_vm11, 1, %v1274_v6 }
 0xb11   :  { %1078 = vmatprep.subr.bf16.mxu0 %v1272_v1 }
 0xb14   :  { %1079 = vmatpush3.bf16.msra.mxu0 %v1369_v5 }
 0xbe2   :  { %v534_v61 = vpop.f32.mrb[12].mxu0 }
 0xbe3   :  { %v540_v62 = vadd.f32 %v534_v61, %v148_v60  ;;  %v1066_v3 = vpop.f32.mrb[13].mxu0 }
 0xbe4   :  { %v537_v8 = vpop.f32.mrb[14].mxu0 }
 0xbe5   :  { %1150 = vtanh.f32 %v540_v62  ;;  %v1067_v11 = vpop.f32.mrb[15].mxu0  ;;  %v979_v14 = vmul.f32 -1.442695, %v540_v62 }
 0xbe7   :  { %1152 = vpow2.f32 %v979_v14 }
 0xbef   :  { %v1151_v12 = vpop.eup %1150 }
 0xbf0   :  { %550 = vrot.lane.b32.xlu1 %v1151_v12, %s1275_s1  ;;  %v1116_v12 = vld [vmem:[%s1641_s6] sm:$0xff]  }
 0xbf1   :  { %v1153_v5 = vpop.eup %1152 }
 0xbf2   :  { %v544_v15 = vadd.f32 1.0, %v1153_v5 }
 0xbf4   :  { %567 = vperm.xlu1 %1107, %v565_v2   ;;  %1154 = vrcp.f32 %v544_v15  ;;  %v1117_v2 = vld [vmem:[%s1641_s6 + $0x8] sm:$0xff]  }
 0xbfe   :  { %v1155_v0 = vpop.eup %1154 }
 0xbff   :  { %v548_v19 = vmul.f32 %v1155_v0, %v492_v18 }
 0xc62   :  { %v551_v16 = vpop.permute.xlu1 %550 }
 0xc63   :  { %v553_v17 = vmul.f32 %v1155_v0, %v551_v16 }
 0xc65   :  { %555 = vrot.lane.b32.xlu0 %v553_v17, %s1276_s5 }
 0xc73   :  { %v568_v10 = vpop.permute.xlu1 %567 }
 0xc74   :  { %vm569_vm12 = vcmp.eq.s32.totalorder %v568_v10, 1 }
 0xcd7   :  { %v556_v20 = vpop.permute.xlu0 %555 }
 0xcd8   :  { %v558_v21 = vadd.f32 %v556_v20, %v548_v19  ;;  %v984_v19 = vld [vmem:[%s1642_s7] ss:$0 sm:$0xff]  ;;  %s1278_s7 = smov [#allocation5]  }
 0xcd9   :  { %s909_s25 = sshll.u32 %s1278_s7, 4  ;;  %s910_s25 = int_to_ptr.vmem [resolvable:$true] %s909_s25 }
 0xcda   :  { %1156 = vtanh.f32 %v558_v21  ;;  %v571_v41 = vsel %vm569_vm12, %v558_v21, %v492_v18  ;;  %s1178_s29 = scalar_lea.vmem %s910_s25, 128  ;;  %p1183_p1 = scmp.lt.s32.totalorder %s910_s25, %s910_s25 }
 0xcdb   :  { %p1179_p0 = scmp.ne.s32.totalorder %s910_s25, %s1178_s29  ;;  %p1184_p2 = scmp.lt.s32.totalorder %s1178_s29, %s1178_s29 }
 0xcdd   :  { %p1185_p3 = por %p1184_p2, %p1183_p1 }
 0xcdf   :  { %p1186_p4 = pnand %p1185_p3, %p1179_p0 }
 0xce4   :  { %v1157_v22 = vpop.eup %1156 }
 0xce5   :  { %561 = vrot.lane.b32.xlu0 %v1157_v22, %s1275_s1 }
 0xd57   :  { %v562_v23 = vpop.permute.xlu0 %561 }
 0xd58   :  { %v564_v24 = vmul.f32 %v1155_v0, %v562_v23 }
 0xd5a   :  { %v570_v25 = vsel %vm569_vm12, %v564_v24, %v491_v57 }
 0xd5b   :  { %v572_v26 = vpack.c.bf16 %v570_v25, %v570_v25 }
 0xd5d   :  { %574 = vrot.lane.b32.xlu1 %v572_v26, %s1276_s5  ;;  %v813_v26 = vlaneseq }
 0xdcf   :  { %v575_v27 = vpop.permute.xlu1 %574 }
 0xdd0   :  { %1073 = vmatmul.mubr.msk.bf16.vlgmr.msra.gmra.mrb[12].mxu1 %vm180_vm4, %v575_v27  ;;  %v814_v27 = vand.u32 127, %v813_v26 }
 0xdd1   :  { %1088 = vmatprep.mubr.msk.bf16.mxu1 %vm1273_vm1, %v1272_v1  ;;  %1085 = vmatpush3.bf16.msra.mxu1 %v1116_v12  ;;  %vm810_vm1 = vcmask 80896  }
 0xdd2   :  { %1086 = vmatprep.subr.bf16.mxu1 %v1272_v1 }
 0xdd5   :  { %1087 = vmatpush3.bf16.msra.mxu1 %v1117_v2 }
 0xea3   :  { %v613_v29 = vpop.f32.mrb[12].mxu1 }
 0xea4   :  { %v619_v30 = vadd.f32 %v613_v29, %v151_v28  ;;  %v1074_v31 = vpop.f32.mrb[13].mxu1 }
 0xea5   :  { %v616_v32 = vpop.f32.mrb[14].mxu1 }
 0xea6   :  { %1158 = vtanh.f32 %v619_v30  ;;  %v1075_v33 = vpop.f32.mrb[15].mxu1  ;;  %v981_v36 = vmul.f32 -1.442695, %v619_v30 }
 0xea8   :  { %1160 = vpow2.f32 %v981_v36 }
 0xeb0   :  { %v1159_v34 = vpop.eup %1158 }
 0xeb1   :  { %629 = vrot.lane.b32.xlu0 %v1159_v34, %s1275_s1 }
 0xeb2   :  { %v1161_v37 = vpop.eup %1160 }
 0xeb3   :  { %v623_v38 = vadd.f32 1.0, %v1161_v37 }
 0xeb5   :  { %646 = vperm.xlu0 %1108, %v644_v35   ;;  %1162 = vrcp.f32 %v623_v38 }
 0xebf   :  { %v1163_v4 = vpop.eup %1162 }
 0xec0   :  { %v627_v42 = vmul.f32 %v1163_v4, %v571_v41 }
 0xf23   :  { %v630_v39 = vpop.permute.xlu0 %629 }
 0xf24   :  { %v632_v40 = vmul.f32 %v1163_v4, %v630_v39 }
 0xf26   :  { %634 = vrot.lane.b32.xlu1 %v632_v40, %s1276_s5 }
 0xf34   :  { %v647_v46 = vpop.permute.xlu0 %646 }
 0xf35   :  { %vm648_vm14 = vcmp.eq.s32.totalorder %v647_v46, 1 }
 0xf98   :  { %v635_v43 = vpop.permute.xlu1 %634 }
 0xf99   :  { %v637_v44 = vadd.f32 %v635_v43, %v627_v42 }
 0xf9b   :  { %1164 = vtanh.f32 %v637_v44  ;;  %v1515_v3 = vsel %vm648_vm14, %v637_v44, %v571_v41 }
 0xfa5   :  { %v1165_v45 = vpop.eup %1164 }
 0xfa6   :  { %640 = vrot.lane.b32.xlu1 %v1165_v45, %s1275_s1 }
0x1018   :  { %v641_v13 = vpop.permute.xlu1 %640 }
0x1019   :  { %v643_v47 = vmul.f32 %v1163_v4, %v641_v13 }
0x101b   :  { %v649_v48 = vsel %vm648_vm14, %v643_v47, %v570_v25  ;;  %v812_v25 = vld [vmem:[%s1637_s2] sm:$0xff]  ;;  %s1277_s2 = smov 96  }
0x101c   :  { %v651_v49 = vpack.c.bf16 %v649_v48, %v649_v48 }
0x101e   :  { %653 = vrot.lane.b32.xlu0 %v651_v49, %s1276_s5 }
0x1090   :  { %v654_v50 = vpop.permute.xlu0 %653 }
0x1091   :  { %1081 = vmatmul.mubr.msk.bf16.vlgmr.msra.gmra.mrb[16].mxu0 %vm180_vm4, %v654_v50 }
0x1164   :  { %v692_v52 = vpop.f32.mrb[16].mxu0 }
0x1165   :  { %v698_v53 = vadd.f32 %v692_v52, %v156_v51  ;;  %v1082_v54 = vpop.f32.mrb[17].mxu0 }
0x1166   :  { %v695_v55 = vpop.f32.mrb[18].mxu0 }
0x1167   :  { %1166 = vtanh.f32 %v698_v53  ;;  %v1083_v56 = vpop.f32.mrb[19].mxu0  ;;  %v983_v59 = vmul.f32 -1.442695, %v698_v53 }
0x1169   :  { %1168 = vpow2.f32 %v983_v59 }
0x1171   :  { %v1167_v57 = vpop.eup %1166 }
0x1172   :  { %708 = vrot.lane.b32.xlu1 %v1167_v57, %s1275_s1 }
0x1173   :  { %v1169_v60 = vpop.eup %1168 }
0x1174   :  { %v702_v61 = vadd.f32 1.0, %v1169_v60 }
0x1176   :  { %725 = vperm.xlu1 %1107, %v723_v58   ;;  %1170 = vrcp.f32 %v702_v61 }
0x1180   :  { %v1171_v9 = vpop.eup %1170 }
0x1181   :  { %v706_v7 = vmul.f32 %v1171_v9, %v1515_v3 }
0x11e4   :  { %v709_v63 = vpop.permute.xlu1 %708 }
0x11e5   :  { %v711_v62 = vmul.f32 %v1171_v9, %v709_v63 }
0x11e7   :  { %713 = vrot.lane.b32.xlu0 %v711_v62, %s1276_s5 }
0x11f5   :  { %v1529_v5 = vpop.permute.xlu1 %725 }
0x11f6   :  { %vm727_vm0 = vcmp.eq.s32.totalorder %v1529_v5, 1 }
0x1259   :  { %v714_v8 = vpop.permute.xlu0 %713 }
0x125a   :  { %v1518_v11 = vadd.f32 %v714_v8, %v706_v7 }
0x125c   :  { %1172 = vtanh.f32 %v1518_v11  ;;  %v729_v60 = vsel %vm727_vm0, %v1518_v11, %v1515_v3 }
0x1266   :  { %v1173_v14 = vpop.eup %1172 }
0x1267   :  { %719 = vrot.lane.b32.xlu0 %v1173_v14, %s1275_s1 }
0x12d9   :  { %v720_v15 = vpop.permute.xlu0 %719 }
0x12da   :  { %v722_v0 = vmul.f32 %v1171_v9, %v720_v15 }
0x12dc   :  { %v1534_v16 = vsel %vm727_vm0, %v722_v0, %v649_v48 }
0x12dd   :  { %v740_v17 = vpack.c.bf16 %v1534_v16, %v1534_v16 }
0x12df   :  { %753 = vrot.lane.b32.xlu1 %v740_v17, %s1276_s5 }
0x1351   :  { %v754_v18 = vpop.permute.xlu1 %753 }
0x1352   :  { %1089 = vmatmul.mubr.msk.bf16.vlgmr.msra.gmra.mrb[16].mxu1 %vm180_vm4, %v754_v18 }
0x1425   :  { %v804_v20 = vpop.f32.mrb[16].mxu1 }
0x1426   :  { %v805_v21 = vadd.f32 %v984_v19, %v804_v20  ;;  %v1090_v22 = vpop.f32.mrb[17].mxu1 }
0x1427   :  { %v807_v10 = vpop.f32.mrb[18].mxu1 }
0x1428   :  { %v1091_v23 = vpop.f32.mrb[19].mxu1  ;;  %v821_v24 = vsel %vm810_vm1, %v805_v21, -inf  ;;  %811 = vst.msk [vmem:[#allocation7] sm:$0xff] %vm810_vm1, %v805_v21 }
0x1429   :  { %822 = vmax.xlane.f32.xlu0 %v821_v24 }
0x143f   :  { %816 = vperm.xlu0 %1108, %v812_v25  }
0x14b6   :  { %v823_v28 = vpop.xlane.xlu0 %822 }
0x14b7   :  { %v824_v29 = vsub.f32 %v805_v21, %v823_v28  ;;  %vm852_vm2 = vcmp.eq.f32.partialorder %v805_v21, %v823_v28 }
0x14b8   :  { %v853_v30 = vsel %vm852_vm2, %v814_v27, 10 }
0x14b9   :  { %v825_v31 = vmul.f32 1.442695, %v824_v29  ;;  %v854_v32 = vsel %vm810_vm1, %v853_v30, 2147483647 }
0x14ba   :  { %v856_v33 = vshra.s32 %v854_v32, 16  ;;  %v855_v38 = vand.u32 65535, %v854_v32 }
0x14bb   :  { %1174 = vpow2.f32 %v825_v31 }
0x14bc   :  { %v858_v34 = vcvt.s32.f32 %v856_v33  ;;  %v857_v40 = vcvt.s32.f32 %v855_v38 }
0x14be   :  { %859 = vmin.xlane.f32.xlu1 %v858_v34  ;;  %v817_v37 = vpop.permute.xlu0 %816 }
0x14bf   :  { %vm818_vm3 = vcmp.eq.s32.totalorder %v814_v27, %v817_v37 }
0x14c0   :  { %v988_v4 = vsel %vm818_vm3, 1.0, %v1272_v1 }
0x14c1   :  { %v833_v42 = vmul.f32 %v988_v4, %v805_v21 }
0x14c3   :  { %v834_v43 = vsel %vm810_vm1, %v833_v42, 0.0 }
0x14c5   :  { %v1175_v35 = vpop.eup %1174 }
0x14c6   :  { %v827_v36 = vsel %vm810_vm1, %v1175_v35, 0.0 }
0x14c7   :  { %828 = vadd.xlane.f32.xlu1 %v827_v36 }
0x154b   :  { %v860_v39 = vpop.xlane.xlu1 %859 }
0x154c   :  { %vm861_vm5 = vcmp.eq.f32.partialorder %v858_v34, %v860_v39  ;;  %v866_v46 = vcvt.f32.s32 %v860_v39 }
0x154d   :  { %v862_v41 = vsel %vm861_vm5, %v857_v40, inf }
0x154e   :  { %863 = vmin.xlane.f32.xlu1 %v862_v41  ;;  %v867_v48 = vshll.u32 %v866_v46, 16 }
0x1552   :  { %835 = vadd.xlane.f32.xlu1 %v834_v43 }
0x1554   :  { %v829_v44 = vpop.xlane.xlu1 %828 }
0x1555   :  { %1176 = vlog2.f32 %v829_v44 }
0x155f   :  { %v1177_v45 = vpop.eup %1176 }
0x1560   :  { %v831_v13 = vmul.f32 0.6931472, %v1177_v45 }
0x1562   :  { %v832_v51 = vadd.f32 %v831_v13, %v823_v28 }
0x15db   :  { %v864_v47 = vpop.xlane.xlu1 %863 }
0x15dc   :  { %v865_v49 = vcvt.f32.s32 %v864_v47 }
0x15de   :  { %v868_v50 = vadd.s32 %v867_v48, %v865_v49 }
0x15df   :  { %v836_v1 = vpop.xlane.xlu1 %835 }
0x15e0   :  { %v837_v52 = vsub.f32 %v832_v51, %v836_v1  ;;  %vm869_vm7 = vcmp.eq.s32.totalorder %v868_v50, %v812_v25 }
0x15e1   :  { %v870_v53 = vsel %vm869_vm7, 1, %v1274_v6 }
0x15e2   :  { %v839_v54 = vsel %vm838_vm6, %v837_v52, 0.0  ;;  %v871_v55 = vsel %vm838_vm6, %v870_v53, 0 }
0x15e3   :  { %840 = vadd.xlane.f32.xlu0 %v839_v54  ;;  %v873_v56 = vshrl.u32 %v871_v55, 16  ;;  %v872_v58 = vand.u32 65535, %v871_v55 }
0x15e5   :  { %v875_v57 = vcvt.s32.f32 %v873_v56  ;;  %v874_v59 = vcvt.s32.f32 %v872_v58 }
0x15e7   :  { %878 = vadd.xlane.f32.xlu1 %v875_v57 }
0x15eb   :  { %876 = vadd.xlane.f32.xlu1 %v874_v59 }
0x15fc   :  { %736 = vrot.lane.b32.xlu1 %v729_v60, %s1277_s2 }
0x1600   :  { %731 = vrot.lane.b32.xlu1 %v1534_v16, %s1276_s5 }
0x1670   :  { %v841_v6 = vpop.xlane.xlu0 %840 }
0x1671   :  { %v842_v61 = vrot.slane %v841_v6, 4 }
0x1673   :  { %v843_v9 = vadd.f32 %v842_v61, %v841_v6 }
0x1674   :  { %v879_v63 = vpop.xlane.xlu1 %878 }
0x1675   :  { %v844_v62 = vrot.slane %v843_v9, 2  ;;  %v881_v7 = vcvt.f32.s32 %v879_v63 }
0x1677   :  { %v845_v8 = vadd.f32 %v844_v62, %v843_v9  ;;  %v882_v2 = vshll.u32 %v881_v7, 16 }
0x1678   :  { %v877_v12 = vpop.xlane.xlu1 %876 }
0x1679   :  { %v880_v14 = vcvt.f32.s32 %v877_v12  ;;  %v846_v15 = vrot.slane %v845_v8, 1 }
0x167b   :  { %v883_v3 = vadd.s32 %v882_v2, %v880_v14  ;;  %v847_v11 = vadd.f32 %v846_v15, %v845_v8 }
0x167c   :  { %v737_v5 = vpop.permute.xlu1 %736 }
0x167d   :  { %v884_v0 = vrot.slane %v883_v3, 4  ;;  %739 = vst.msk [vmem:[#allocation5] sm:$0xff] %vm180_vm4, %v737_v5 }
0x167e   :  { %1092 = vpush %v847_v11 }
0x167f   :  { %1189 = shalt.err (!%p1186_p4)
}
0x1680   :  { %s1190_s13 = scalar_lea.hbm %s1644_s9, 128 }
0x1681   :  { %p1191_p5 = scmp.ne.s32.totalorder %s1644_s9, %s1190_s13  ;;  %p1194_p6 = scmp.lt.u32.totalorder %s1190_s13, %s1644_s9 }
0x1683   :  { %p1196_p7 = pnand %p1194_p6, %p1191_p5 }
0x1685   :  { %1199 = shalt.err (!%p1196_p7)
}
0x1686   :  { %912 = dma.vmem_to_hbm [thread:$0]  %s910_s25, 128, %s1644_s9, [#allocation6]   ;;  %v885_v16 = vadd.s32 %v884_v0, %v883_v3 }
0x1687   :  { %s1200_s18 = scalar_lea.vmem %s1559_s27, 128  ;;  %p1205_p9 = scmp.lt.s32.totalorder %s1559_s27, %s1559_s27 }
0x1688   :  { %p1201_p8 = scmp.ne.s32.totalorder %s1559_s27, %s1200_s18  ;;  %p1206_p10 = scmp.lt.s32.totalorder %s1200_s18, %s1200_s18 }
0x168a   :  { %p1207_p11 = por %p1206_p10, %p1205_p9 }
0x168c   :  { %p1208_p12 = pnand %p1207_p11, %p1201_p8 }
0x168e   :  { %1211 = shalt.err (!%p1208_p12)
}
0x168f   :  { %s1212_s20 = scalar_lea.hbm %s1645_s10, 128 }
0x1690   :  { %p1213_p13 = scmp.ne.s32.totalorder %s1645_s10, %s1212_s20  ;;  %p1216_p0 = scmp.lt.u32.totalorder %s1212_s20, %s1645_s10 }
0x1692   :  { %p1218_p1 = pnand %p1216_p0, %p1213_p13 }
0x1694   :  { %1221 = shalt.err (!%p1218_p1)
}
0x1695   :  { %922 = dma.vmem_to_hbm [thread:$0]  %s1559_s27, 128, %s1645_s10, [#allocation6]   ;;  %v732_v17 = vpop.permute.xlu1 %731  ;;  %v886_v18 = vrot.slane %v885_v16, 2 }
0x1696   :  { %734 = vst.msk [vmem:[#allocation2] sm:$0xff] %vm180_vm4, %v732_v17  ;;  %s1222_s2 = scalar_lea.vmem %s1562_s3, 128  ;;  %p1227_p3 = scmp.lt.s32.totalorder %s1562_s3, %s1562_s3 }
0x1697   :  { %p1223_p2 = scmp.ne.s32.totalorder %s1562_s3, %s1222_s2  ;;  %p1228_p4 = scmp.lt.s32.totalorder %s1222_s2, %s1222_s2 }
0x1699   :  { %p1229_p5 = por %p1228_p4, %p1227_p3 }
0x169b   :  { %p1230_p6 = pnand %p1229_p5, %p1223_p2 }
0x169d   :  { %1233 = shalt.err (!%p1230_p6)
}
0x169e   :  { %s1234_s26 = scalar_lea.hbm %s1643_s8, 128 }
0x169f   :  { %p1235_p7 = scmp.ne.s32.totalorder %s1643_s8, %s1234_s26  ;;  %p1238_p8 = scmp.lt.u32.totalorder %s1234_s26, %s1643_s8 }
0x16a1   :  { %p1240_p9 = pnand %p1238_p8, %p1235_p7 }
0x16a3   :  { %1243 = shalt.err (!%p1240_p9)
}
0x16a4   :  { %902 = dma.vmem_to_hbm [thread:$0]  %s1562_s3, 128, %s1643_s8, [#allocation3]   ;;  %v887_v19 = vadd.s32 %v886_v18, %v885_v16 }
0x16a5   :  { %s1244_s15 = scalar_lea.hbm %s1646_s11, 16 }
0x16a6   :  { %v888_v20 = vrot.slane %v887_v19, 1  ;;  %p1245_p10 = scmp.ne.s32.totalorder %s1646_s11, %s1244_s15  ;;  %p1248_p11 = scmp.lt.u32.totalorder %s1244_s15, %s1646_s11 }
0x16a8   :  { %v889_v21 = vadd.s32 %v888_v20, %v887_v19  ;;  %p1250_p12 = pnand %p1248_p11, %p1245_p10 }
0x16aa   :  { %1094 = vpush %v889_v21 }
0x16af   :  { %s1093_s13 = spop %1092 }
0x16b0   :  { %s849_s14 = smul.f32 0.125, %s1093_s13 }
0x16b2   :  { %851 = sst [smem:[#allocation8]] %s849_s14 }
0x16b3   :  { %1253 = shalt.err (!%p1250_p12)
}
0x16b4   :  { %s1281_s8 = smov [#allocation8]   ;;  %s1254_s22 = scalar_lea.hbm %s1647_s12, 16 }
0x16b5   :  { %930 = dma.smem_to_hbm %s1281_s8, 16, %s1646_s11, [#allocation4]  }
0x16b6   :  { %p1255_p13 = scmp.ne.s32.totalorder %s1647_s12, %s1254_s22  ;;  %p1258_p0 = scmp.lt.u32.totalorder %s1254_s22, %s1647_s12 }
0x16b8   :  { %p1260_p1 = pnand %p1258_p0, %p1255_p13 }
0x16db   :  { %s1095_s20 = spop %1094 }
0x16dc   :  { %892 = sst [smem:[#allocation9]] %s1095_s20 }
0x16dd   :  { %1263 = shalt.err (!%p1260_p1)
}
0x16de   :  { %s1282_s7 = smov [#allocation9]  }
0x16df   :  { %938 = dma.smem_to_hbm %s1282_s7, 16, %s1647_s12, [#allocation10]  }
0x16e0   :  { %1264 = dma.done.wait [#allocation3], 128  }
0x16e1   :  { %1265 = vsyncadd [#allocation3], 4294967168 }
0x16e2   :  { %1266 = dma.done.wait [#allocation6], 256  }
0x16e3   :  { %1267 = vsyncadd [#allocation6], 4294967040 }
0x16e4   :  { %1268 = dma.done.wait [#allocation4], 16  }
0x16e5   :  { %1269 = vsyncadd [#allocation4], 4294967280 }
0x16e6   :  { %1270 = dma.done.wait [#allocation10], 16  }
0x16e7   :  { %1271 = vsyncadd [#allocation10], 4294967280 }
0x16e8   :  { %954 = sfence }
0x16e9   :  { %955 = vsyncpa [#allocation3], 1 }
0x16ea   :  { %956 = vsyncpa [#allocation6], 1 }
0x16eb   :  { %957 = vsyncpa [#allocation4], 1 }
0x16ec   :  { %958 = vsyncpa [#allocation10], 1 }

</bundles_post_ra>
